<compile_context>
chip_gen: v6e
topology: v6e:2x2x1
jax: 0.10.0
libtpu: 0.0.40
codegen_flags: <defaults>
</compile_context>

<pallas_src>
import functools

import jax
import jax.numpy as jnp
from jax import lax
from jax.experimental import pallas as pl
from jax.experimental.pallas import tpu as pltpu

_LANES = 128
_SUBLANES = 8


def _bce_sum_kernel(recons_ref, input_ref, acc_ref, *,
                    rows, tile_rows, blocks_per_core):
    """Streams (tile_rows, 128) blocks and accumulates the BCE sum into an
    (8, 128) f32 accumulator that lives in the output block (one per partial)."""
    c = pl.program_id(0)          # parallel partial (TensorCore on v7x)
    i = pl.program_id(1)          # streamed block within this partial

    @pl.when(i == 0)
    def _init():
        acc_ref[...] = jnp.zeros_like(acc_ref)

    # Logical (global) block index / starting row of this block.
    block_idx = c * blocks_per_core + i
    row_start = block_idx * tile_rows

    # Mask the ragged tail of the last block.  Sanitize BEFORE the logs:
    # recons=1, input=1 contributes exactly 0 under the -100 clamp.
    row_ids = lax.broadcasted_iota(jnp.int32, (tile_rows, _LANES), 0) + row_start
    valid = row_ids < rows

    one = jnp.float32(1.0)
    x = jnp.where(valid, recons_ref[...].astype(jnp.float32), one)
    y = jnp.where(valid, input_ref[...].astype(jnp.float32), one)

    # PyTorch BCE clamps the log terms at -100 for numerical stability.
    log_x = jnp.maximum(jnp.log(x), -100.0)
    log_1mx = jnp.maximum(jnp.log(one - x), -100.0)
    # -(y*log_x + (1-y)*log_1mx)  ==  -(log_1mx + y*(log_x - log_1mx))
    bce = -(log_1mx + y * (log_x - log_1mx))

    # VPU-only partial reduction: fold whole (8,128) vregs onto the accumulator.
    partial = jnp.sum(bce.reshape(tile_rows // _SUBLANES, _SUBLANES, _LANES), axis=0)
    acc_ref[...] += partial


def vae_loss(recons, inputs, mu, log_var, kld_weight: float = 0.005,
             tile_rows=None, num_partials: int = 2):
    """Pallas implementation of VAELoss.forward. Returns a dict of scalars."""
    numel = recons.size

    if tile_rows is None:
        # >= ~1 MiB per streamed DMA block: 2048 rows for f32, 4096 for bf16/fp16.
        tile_rows = 2048 if jnp.dtype(recons.dtype).itemsize >= 4 else 4096

    flat_r = recons.reshape(-1)
    flat_i = inputs.reshape(-1)

    # The lane-dense slab needs numel % (8*128) == 0.  Only in that (rare)
    # failure case do we pad; padding with 1.0 contributes exactly 0 to the
    # clamped BCE sum.
    chunk = _SUBLANES * _LANES
    padded = ((numel + chunk - 1) // chunk) * chunk
    if padded != numel:
        # TODO(synk): the <1024-element tail could be handled in plain JAX to
        # avoid this full-array copy; it is only hit when numel % 1024 != 0.
        pad = padded - numel
        flat_r = jnp.pad(flat_r, (0, pad), constant_values=1.0)
        flat_i = jnp.pad(flat_i, (0, pad), constant_values=1.0)

    rows = padded // _LANES                     # multiple of 8
    tr = max(_SUBLANES, (min(int(tile_rows), rows) // _SUBLANES) * _SUBLANES)

    r2 = flat_r.reshape(rows, _LANES)           # native dtype; f32 upcast in-kernel
    i2 = flat_i.reshape(rows, _LANES)

    nblocks = pl.cdiv(rows, tr)
    ncores = max(1, int(num_partials))
    if ncores > 1 and nblocks > 1 and nblocks % ncores != 0:
        # Nudge the tile slightly smaller so the block count splits evenly
        # across the parallel partials (keeps every index_map in range).
        target = ((nblocks + ncores - 1) // ncores) * ncores
        tr_alt = max(_SUBLANES,
                     ((pl.cdiv(rows, target) + _SUBLANES - 1) // _SUBLANES) * _SUBLANES)
        if pl.cdiv(rows, tr_alt) % ncores == 0:
            tr = tr_alt
            nblocks = pl.cdiv(rows, tr)
    if nblocks % ncores != 0:
        ncores = 1                               # fall back: no block-index overrun
    bpc = nblocks // ncores

    kernel = functools.partial(_bce_sum_kernel,
                               rows=rows, tile_rows=tr, blocks_per_core=bpc)

    def stream_map(c, i):
        return (c * bpc + i, 0)

    cost = pl.CostEstimate(
        flops=int(10 * numel),
        transcendentals=int(2 * numel),
        bytes_accessed=int(r2.size * r2.dtype.itemsize
                           + i2.size * i2.dtype.itemsize
                           + ncores * _SUBLANES * _LANES * 4),
    )

    partials = pl.pallas_call(
        kernel,
        out_shape=jax.ShapeDtypeStruct((ncores * _SUBLANES, _LANES), jnp.float32),
        grid_spec=pltpu.PrefetchScalarGridSpec(
            num_scalar_prefetch=0,
            grid=(ncores, bpc),
            in_specs=[
                pl.BlockSpec((tr, _LANES), stream_map),   # recons (streamed)
                pl.BlockSpec((tr, _LANES), stream_map),   # input  (streamed)
            ],
            out_specs=pl.BlockSpec((_SUBLANES, _LANES), lambda c, i: (c, 0)),
        ),
        compiler_params=pltpu.CompilerParams(
            dimension_semantics=("parallel", "arbitrary"),
        ),
        cost_estimate=cost,
    )(r2, i2)

    # Tiny finalize in plain JAX: cross-lane reduce of the partials + KLD.
    bce_sum = jnp.sum(partials)
    recons_loss = bce_sum / jnp.float32(numel)

    mu32 = mu.astype(jnp.float32)
    lv32 = log_var.astype(jnp.float32)
    kld_loss = jnp.mean(-0.5 * jnp.sum(1.0 + lv32 - mu32 * mu32 - jnp.exp(lv32), axis=1))

    loss = recons_loss + jnp.float32(kld_weight) * kld_loss
    return {"loss": loss, "reconstruct": recons_loss, "kld_loss": -kld_loss}


def _reference(recons, inputs, mu, log_var, kld_weight):
    """Pure-JAX mirror of the PyTorch forward."""
    r = recons.astype(jnp.float32)
    x = inputs.astype(jnp.float32)
    log_r = jnp.maximum(jnp.log(r), -100.0)
    log_1mr = jnp.maximum(jnp.log(1.0 - r), -100.0)
    recon = jnp.mean(-(x * log_r + (1.0 - x) * log_1mr))
    kld = jnp.mean(-0.5 * jnp.sum(1.0 + log_var - mu ** 2 - jnp.exp(log_var), axis=1))
    return recon + kld_weight * kld, recon, -kld


if __name__ == "__main__":
    key = jax.random.PRNGKey(0)
    k1, k2, k3, k4 = jax.random.split(key, 4)

    B, C, H, W = 2, 4, 16, 16   # NCHW image-like tensors
    D = 32                      # latent dim
    KW = 0.005

    # recons must lie in (0, 1) for BCE; input in [0, 1].
    recons = jax.nn.sigmoid(jax.random.normal(k1, (B, C, H, W), jnp.float32))
    inputs = jax.random.uniform(k2, (B, C, H, W), jnp.float32, minval=0.0, maxval=1.0)
    mu = jax.random.normal(k3, (B, D), jnp.float32)
    log_var = jax.random.normal(k4, (B, D), jnp.float32) * 0.1

    def check(out, ref, rtol=1e-5, atol=1e-6):
        out = {k: jax.block_until_ready(v) for k, v in out.items()}
        ref_loss, ref_recon, ref_kld = ref
        assert jnp.allclose(out["reconstruct"], ref_recon, rtol=rtol, atol=atol)
        assert jnp.allclose(out["kld_loss"], ref_kld, rtol=rtol, atol=atol)
        assert jnp.allclose(out["loss"], ref_loss, rtol=rtol, atol=atol)

    ref0 = _reference(recons, inputs, mu, log_var, KW)

    # 1) small tile -> 2 blocks -> both parallel partials exercised (grid=(2,1)).
    check(vae_loss(recons, inputs, mu, log_var, KW, tile_rows=8), ref0)

    # 2) default tile (single block) and native-bf16 streaming (no wrapper upcast).
    check(vae_loss(recons, inputs, mu, log_var, KW), ref0)
    r_bf, i_bf = recons.astype(jnp.bfloat16), inputs.astype(jnp.bfloat16)
    check(vae_loss(r_bf, i_bf, mu, log_var, KW),
          _reference(r_bf, i_bf, mu, log_var, KW), rtol=1e-4, atol=1e-5)

    # 3) ragged last block (rows=24, tile=16 -> masked tail) and multi-step
    #    in-core accumulation (rows=24, tile=8 -> inner grid axis of 3).
    recons2 = jax.nn.sigmoid(jax.random.normal(k1, (B, C, H, 24), jnp.float32))
    inputs2 = jax.random.uniform(k2, (B, C, H, 24), jnp.float32)
    ref2 = _reference(recons2, inputs2, mu, log_var, KW)
    check(vae_loss(recons2, inputs2, mu, log_var, KW, tile_rows=16), ref2)
    check(vae_loss(recons2, inputs2, mu, log_var, KW, tile_rows=8), ref2)

    # 4) numel not a multiple of 1024 -> small-pad fallback path.
    recons3 = jax.nn.sigmoid(jax.random.normal(k1, (B, C, 15, W), jnp.float32))
    inputs3 = jax.random.uniform(k2, (B, C, 15, W), jnp.float32)
    check(vae_loss(recons3, inputs3, mu, log_var, KW, tile_rows=8),
          _reference(recons3, inputs3, mu, log_var, KW))

    print("KERNEL_OK")
</pallas_src>

<mosaic_0001>
module attributes {stable_mosaic.version = 11 : i64} {
  func.func @_bce_sum_kernel(%arg0: i32, %arg1: i32, %arg2: memref<8x128xf32, #tpu.memory_space<vmem>>, %arg3: memref<8x128xf32, #tpu.memory_space<vmem>>, %arg4: memref<8x128xf32, #tpu.memory_space<vmem>>) attributes {dimension_semantics = [#tpu.dimension_semantics<parallel>, #tpu.dimension_semantics<arbitrary>], iteration_bounds = array<i64: 2, 1>, scalar_prefetch = 0 : i64, scratch_operands = 0 : i64, tpu.core_type = #tpu.core_type<tc>, window_params = [{transform_indices = @transform_0, window_bounds = array<i64: 8, 128>}, {transform_indices = @transform_1, window_bounds = array<i64: 8, 128>}, {transform_indices = @transform_2, window_bounds = array<i64: 8, 128>}]} {
    %c0_i32 = arith.constant 0 : i32
    %0 = arith.cmpi eq, %arg1, %c0_i32 : i32
    %1 = arith.extui %0 : i1 to i32
    %c0_i32_0 = arith.constant 0 : i32
    %2 = arith.cmpi ne, %1, %c0_i32_0 : i32
    scf.if %2 {
      %cst_14 = arith.constant 0.000000e+00 : f32
      %35 = vector.broadcast %cst_14 : f32 to vector<8x128xf32>
      %c0_15 = arith.constant 0 : index
      %c0_16 = arith.constant 0 : index
      %36 = vector.load %arg4[%c0_15, %c0_16] : memref<8x128xf32, #tpu.memory_space<vmem>>, vector<8x128xf32>
      tpu.vector_store %arg4[%c0_15, %c0_16], %35 {strides = array<i32>} : memref<8x128xf32, #tpu.memory_space<vmem>>, vector<8x128xf32>,
    } else {
    }
    %c1_i32 = arith.constant 1 : i32
    %3 = arith.muli %arg0, %c1_i32 : i32
    %4 = arith.addi %3, %arg1 : i32
    %c8_i32 = arith.constant 8 : i32
    %5 = arith.muli %4, %c8_i32 : i32
    %6 = tpu.iota {dimensions = array<i32: 0>} : vector<8x128xi32>
    %7 = vector.broadcast %5 : i32 to vector<8x128xi32>
    %8 = arith.addi %6, %7 : vector<8x128xi32>
    %c16_i32 = arith.constant 16 : i32
    %9 = vector.broadcast %c16_i32 : i32 to vector<8x128xi32>
    %10 = arith.cmpi slt, %8, %9 : vector<8x128xi32>
    %c0 = arith.constant 0 : index
    %c0_1 = arith.constant 0 : index
    %11 = vector.load %arg2[%c0, %c0_1] : memref<8x128xf32, #tpu.memory_space<vmem>>, vector<8x128xf32>
    %cst = arith.constant 1.000000e+00 : f32
    %12 = vector.broadcast %cst : f32 to vector<8x128xf32>
    %13 = arith.select %10, %11, %12 : vector<8x128xi1>, vector<8x128xf32>
    %c0_2 = arith.constant 0 : index
    %c0_3 = arith.constant 0 : index
    %14 = vector.load %arg3[%c0_2, %c0_3] : memref<8x128xf32, #tpu.memory_space<vmem>>, vector<8x128xf32>
    %cst_4 = arith.constant 1.000000e+00 : f32
    %15 = vector.broadcast %cst_4 : f32 to vector<8x128xf32>
    %16 = arith.select %10, %14, %15 : vector<8x128xi1>, vector<8x128xf32>
    %17 = math.log %13 : vector<8x128xf32>
    %cst_5 = arith.constant -1.000000e+02 : f32
    %18 = vector.broadcast %cst_5 : f32 to vector<8x128xf32>
    %19 = arith.maximumf %17, %18 : vector<8x128xf32>
    %cst_6 = arith.constant 1.000000e+00 : f32
    %20 = vector.broadcast %cst_6 : f32 to vector<8x128xf32>
    %21 = arith.subf %20, %13 : vector<8x128xf32>
    %22 = math.log %21 : vector<8x128xf32>
    %cst_7 = arith.constant -1.000000e+02 : f32
    %23 = vector.broadcast %cst_7 : f32 to vector<8x128xf32>
    %24 = arith.maximumf %22, %23 : vector<8x128xf32>
    %25 = arith.subf %19, %24 : vector<8x128xf32>
    %26 = arith.mulf %16, %25 : vector<8x128xf32>
    %27 = arith.addf %24, %26 : vector<8x128xf32>
    %cst_8 = arith.constant 0.000000e+00 : f32
    %28 = vector.broadcast %cst_8 : f32 to vector<8x128xf32>
    %29 = arith.subf %28, %27 : vector<8x128xf32>
    %30 = vector.shape_cast %29 : vector<8x128xf32> to vector<1x8x128xf32>
    %cst_9 = arith.constant dense<0.000000e+00> : vector<8x128xf32>
    %31 = vector.multi_reduction <add>, %30, %cst_9 [0] : vector<1x8x128xf32> to vector<8x128xf32>
    %c0_10 = arith.constant 0 : index
    %c0_11 = arith.constant 0 : index
    %32 = vector.load %arg4[%c0_10, %c0_11] : memref<8x128xf32, #tpu.memory_space<vmem>>, vector<8x128xf32>
    %33 = arith.addf %32, %31 : vector<8x128xf32>
    %c0_12 = arith.constant 0 : index
    %c0_13 = arith.constant 0 : index
    %34 = vector.load %arg4[%c0_12, %c0_13] : memref<8x128xf32, #tpu.memory_space<vmem>>, vector<8x128xf32>
    tpu.vector_store %arg4[%c0_12, %c0_13], %33 {strides = array<i32>} : memref<8x128xf32, #tpu.memory_space<vmem>>, vector<8x128xf32>,
    return
  }
  func.func @transform_0(%arg0: i32, %arg1: i32) -> (i32, i32) {
    %c1_i32 = arith.constant 1 : i32
    %0 = arith.muli %arg0, %c1_i32 : i32
    %1 = arith.addi %0, %arg1 : i32
    %c0_i32 = arith.constant 0 : i32
    %c0_i32_0 = arith.constant 0 : i32
    return %1, %c0_i32 : i32, i32
  }
  func.func @transform_1(%arg0: i32, %arg1: i32) -> (i32, i32) {
    %c1_i32 = arith.constant 1 : i32
    %0 = arith.muli %arg0, %c1_i32 : i32
    %1 = arith.addi %0, %arg1 : i32
    %c0_i32 = arith.constant 0 : i32
    %c0_i32_0 = arith.constant 0 : i32
    return %1, %c0_i32 : i32, i32
  }
  func.func @transform_2(%arg0: i32, %arg1: i32) -> (i32, i32) {
    %c0_i32 = arith.constant 0 : i32
    %c0_i32_0 = arith.constant 0 : i32
    return %arg0, %c0_i32 : i32, i32
  }
}

</mosaic_0001>

<bundles_post_ra>
// kernel: tpu_custom_call.1
= control target key start
LH: loop header
LB: loop body
LE: loop exit
PB: predicated region body
PF: predicated region fallthrough
CT: control target
= control target key end

     0   :  { %7 = vsyncpa [#allocation3], 0  ;;  %s780_s0 = inlined_call_operand.hbm [shape: f32[16,128], index: 0, kind: input, shape index: {}]   ;;  %s781_s1 = inlined_call_operand.hbm [shape: f32[16,128], index: 1, kind: input, shape index: {}]   ;;  %s782_s2 = inlined_call_operand.hbm [shape: f32[16,128], index: 2, kind: output, shape index: {}]  }
   0x1   :  { %9 = vsyncpa [#allocation3 + $0x1], 0 }
   0x2   :  { %10 = vsyncpa [#allocation6], 0 }
   0x3   :  { %12 = vsyncpa [#allocation6 + $0x1], 0 }
   0x4   :  { %13 = vsyncpa [#allocation4], 0 }
   0x5   :  { %15 = vsyncpa [#allocation4 + $0x1], 0  ;;  %s613_s9 = smov 0   ;;  %s615_s10 = smov 0  }
   0x6   :  { %s617_s11 = smov 0   ;;  %s619_s12 = smov 0  }
   0x7   :  { %s621_s13 = smov 0   ;;  %s623_s14 = smov 0  }
   0x8 LB: > { %s364_s15 = sadd.s32 4294967295, %s593_s14   ;;  %s365_s16 = sadd.s32 4294967294, %s593_s14   ;;  %s593_s14 = sphi %s623_s14, %s21_s14   ;;  %s589_s13 = sphi %s621_s13, %s794_s13   ;;  %s585_s12 = sphi %s619_s12, %s793_s12   ;;  %s581_s11 = sphi %s617_s11, %s792_s11   ;;  %s577_s10 = sphi %s615_s10, %s791_s10   ;;  %s573_s9 = sphi %s613_s9, %s790_s9  }
   0x9   : > { %s33_s17 = sadd.s32 1, %s589_s13  ;;  %s42_s18 = sadd.s32 1, %s581_s11 }
   0xa   : > { %p35_p0 = scmp.ge.s32.totalorder %s33_s17, 2  ;;  %p49_p1 = scmp.ne.s32.totalorder %s581_s11, %s577_s10 }
   0xb   : > { %p50_p2 = scmp.eq.s32.totalorder %s593_s14, 0  ;;  %p55_p3 = scmp.ne.s32.totalorder %s577_s10, %s573_s9 }
   0xc   : > { %s796_s17 = smov (%p35_p0, %s33_s17), 0  ;;  %p56_p5 = scmp.eq.s32.totalorder %s364_s15, 0 }
   0xd   : > { %p654_p4 = por %p50_p2, %p49_p1  ;;  %s39_s20 = ssub.s32 %s589_s13, %s796_s17 }
   0xe   : > { %p107_p6 = scmp.eq.s32.totalorder %s364_s15, 1  ;;  %p40_p7 = scmp.eq.s32.totalorder %s39_s20, 0 }
   0xf   : > { %p660_p8 = por %p56_p5, %p55_p3  ;;  %p113_p10 = scmp.eq.s32.totalorder %s365_s16, 1 }
  0x10   : > { %p664_p9 = por %p107_p6, %p49_p1  ;;  %p398_p13 = scmp.lt.s32.totalorder %s593_s14, 2 }
  0x11   : > { %s669_s23 = scalar_select %p40_p7, %s581_s11, %s42_s18  }
  0x12   : > { %p671_p11 = por %p113_p10, %p55_p3  ;;  %s678_s25 = sand.u32 1, %s581_s11  }
  0x13   : > { %s368_s26 = sshll.u32 %s678_s25, 3  ;;  %s369_s27 = sshll.u32 %s589_s13, 7 }
  0x14   : > { %s143_s30 = scalar_lea.hbm %s780_s0, %s369_s27  ;;  %s137_s3 = scalar_lea.vmem [#allocation2], %s368_s26 }
  0x15   : > { %s145_s4 = sshll.u32 %s137_s3, 4  ;;  %p687_p0 = pnand %p398_p13, %p654_p4  ;;  %s146_s4 = int_to_ptr.vmem [resolvable:$true] %s145_s4 }
  0x16   : > { %p372_p1 = scmp.ge.s32.totalorder %s593_s14, 1  ;;  %p169_p2 = scmp.lt.s32.totalorder %s593_s14, 3 }
  0x17   : > { %s134_s6 = scalar_lea.sflag [#allocation3], %s678_s25  ;;  %p455_p3 = pneg %p687_p0 }
  0x18   : > { %s466_s7 = scalar_lea.vmem %s146_s4, 128  ;;  %s595_s8 = smov [#allocation2]  }
  0x19   : > { %p467_p5 = scmp.ne.s32.totalorder %s146_s4, %s466_s7  ;;  %s471_s15 = sshll.u32 %s595_s8, 4  ;;  %s472_s15 = int_to_ptr.vmem [resolvable:$false] %s471_s15 }
  0x1a   : > { %s473_s16 = scalar_lea.vmem %s472_s15, 256  ;;  %p474_p4 = scmp.lt.s32.totalorder %s146_s4, %s472_s15 }
  0x1b   : > { %p469_p6 = pnand %p467_p5, %p455_p3  ;;  %p475_p10 = scmp.lt.s32.totalorder %s473_s16, %s466_s7 }
  0x1d   : > { %p470_p7 = pneg %p469_p6  ;;  %p476_p13 = por %p475_p10, %p474_p4 }
  0x1f   : > { %p477_p12 = pnand %p476_p13, %p470_p7 }
  0x21   : > { %480 = shalt.err (!%p477_p12)
}
  0x22   : > { %390 = dma.hbm_to_vmem [thread:$0]  (!%p687_p0), %s143_s30, 128, %s146_s4, %s134_s6  }
  0x23   : > { %p705_p5 = pnand %p372_p1, %p169_p2  ;;  %s162_s28 = scalar_lea.hbm %s781_s1, %s369_s27 }
  0x24   : > { %s156_s29 = scalar_lea.vmem [#allocation5], %s368_s26  ;;  %s153_s7 = scalar_lea.sflag [#allocation6], %s678_s25 }
  0x25   : > { %s164_s3 = sshll.u32 %s156_s29, 4  ;;  %s596_s30 = smov [#allocation5]   ;;  %s165_s3 = int_to_ptr.vmem [resolvable:$true] %s164_s3 }
  0x26   : > { %s494_s8 = scalar_lea.vmem %s165_s3, 128  ;;  %s499_s4 = sshll.u32 %s596_s30, 4  ;;  %s500_s4 = int_to_ptr.vmem [resolvable:$false] %s499_s4 }
  0x27   : > { %p495_p12 = scmp.ne.s32.totalorder %s165_s3, %s494_s8  ;;  %s501_s6 = scalar_lea.vmem %s500_s4, 256 }
  0x28   : > { %p502_p1 = scmp.lt.s32.totalorder %s165_s3, %s500_s4  ;;  %p503_p2 = scmp.lt.s32.totalorder %s501_s6, %s494_s8 }
  0x29   : > { %p497_p6 = pnand %p495_p12, %p455_p3 }
  0x2a   : > { %p504_p4 = por %p503_p2, %p502_p1 }
  0x2b   : > { %p498_p7 = pneg %p497_p6 }
  0x2d   : > { %p505_p10 = pnand %p504_p4, %p498_p7 }
  0x2f   : > { %508 = shalt.err (!%p505_p10)
}
  0x30   : > { %393 = dma.hbm_to_vmem [thread:$0]  (!%p687_p0), %s162_s28, 128, %s165_s3, %s153_s7  }
  0x31   : > { %173 = sbr.rel (%p705_p5) target bundleno = 106 (0x6a), region = 28  ;;  %s721_s25 = sand.u32 (!%p705_p5), 1, %s577_s10  }
  0x32   : > { %s724_s26 = sshll.u32 (!%p705_p5), %s721_s25, 3  ;;  %s176_s27 = scalar_lea.sflag (!%p705_p5), [#allocation3], %s721_s25 }
  0x33   : > { %s179_s15 = scalar_lea.vmem (!%p705_p5), [#allocation2], %s724_s26 }
  0x36   : > { %560 = dma.done.wait (%p660_p8), %s176_s27, 128  }
  0x37   : > { %562 = vsyncadd (%p660_p8), %s176_s27, 4294967168  ;;  %s185_s5 = scalar_lea.sflag [#allocation6], %s721_s25  ;;  %s188_s16 = scalar_lea.vmem [#allocation5], %s724_s26 }
  0x38   : > { %564 = dma.done.wait (%p660_p8), %s185_s5, 128  }
  0x39   : > { %566 = vsyncadd (%p660_p8), %s185_s5, 4294967168  ;;  %s376_s18 = sshll.u32 %s585_s12, 3  ;;  %v223_v0 = vlaneseq  ;;  %v228_v4 = vld [vmem:[%s179_s15] sm:$0xff]  ;;  %v230_v10 = vld [vmem:[%s188_s16] sm:$0xff]  ;;  %s378_s21 = sshll.u32 %s585_s12, 7 }
  0x3a   : > { %v225_v1 = vstv %s376_s18  ;;  %s213_s19 = scalar_lea.vmem [#allocation7], %s724_s26  ;;  %s259_s3 = scalar_lea.hbm %s782_s2, %s378_s21 }
  0x3b   : > { %v224_v2 = vshrl.u32 %v223_v0, 7  ;;  %s261_s20 = sshll.u32 %s213_s19, 4  ;;  %s248_s7 = scalar_lea.sflag [#allocation4], %s721_s25  ;;  %s262_s20 = int_to_ptr.vmem [resolvable:$true] %s261_s20 }
  0x3c   : > { %s509_s8 = scalar_lea.vmem %s262_s20, 128  ;;  %s597_s30 = smov [#allocation7]  }
  0x3d   : > { %v226_v3 = vadd.s32 %v225_v1, %v224_v2  ;;  %p510_p8 = scmp.ne.s32.totalorder %s262_s20, %s509_s8  ;;  %s513_s4 = sshll.u32 %s597_s30, 4  ;;  %s514_s4 = int_to_ptr.vmem [resolvable:$false] %s513_s4 }
  0x3e   : > { %s515_s6 = scalar_lea.vmem %s514_s4, 256  ;;  %p516_p13 = scmp.lt.s32.totalorder %s262_s20, %s514_s4 }
  0x3f   : > { %vm227_vm0 = vcmp.lt.s32.totalorder %v226_v3, 16  ;;  %p511_p0 = pnand %p510_p8, %p664_p9  ;;  %p517_p5 = scmp.lt.s32.totalorder %s515_s6, %s509_s8 }
  0x40   : > { %v229_v5 = vsel %vm227_vm0, %v228_v4, 1.0  ;;  %v231_v14 = vsel %vm227_vm0, %v230_v10, 1.0 }
  0x41   : > { %449 = vlog2.f32 %v229_v5  ;;  %v235_v6 = vsub.f32 1.0, %v229_v5  ;;  %p512_p3 = pneg %p511_p0  ;;  %p518_p12 = por %p517_p5, %p516_p13 }
  0x43   : > { %451 = vlog2.f32 %v235_v6  ;;  %p519_p6 = pnand %p518_p12, %p512_p3 }
  0x4e   : > { %v450_v7 = vpop.eup %449 }
  0x4f   : > { %v233_v8 = vmul.f32 0.6931472, %v450_v7 }
  0x50   : > { %v452_v9 = vpop.eup %451 }
  0x51   : > { %v234_v11 = vmax.f32 %v233_v8, -100.0  ;;  %v237_v12 = vmul.f32 0.6931472, %v452_v9 }
  0x53   : > { %v238_v13 = vmax.f32 %v237_v12, -100.0 }
  0x55   : > { %v239_v15 = vsub.f32 %v234_v11, %v238_v13 }
  0x57   : > { %v240_v16 = vmul.f32 %v239_v15, %v231_v14 }
  0x59   : > { %v241_v17 = vadd.f32 %v240_v16, %v238_v13 }
  0x5b   : > { %v242_v18 = vsub.f32 0.0, %v241_v17 }
  0x5d   : > { %246 = vst [vmem:[%s213_s19] sm:$0xff] %v242_v18 }
  0x5e   : > { %522 = shalt.err (!%p519_p6)
}
  0x5f   : > { %s523_s12 = scalar_lea.hbm %s259_s3, 128  ;;  %s527_s27 = scalar_lea.hbm %s782_s2, 256 }
  0x60   : > { %p524_p7 = scmp.ne.s32.totalorder %s259_s3, %s523_s12  ;;  %p528_p4 = scmp.lt.s32.totalorder %s259_s3, %s782_s2 }
  0x61   : > { %p529_p10 = scmp.lt.s32.totalorder %s527_s27, %s523_s12 }
  0x62   : > { %p525_p1 = pnand %p524_p7, %p664_p9 }
  0x63   : > { %p530_p8 = por %p529_p10, %p528_p4 }
  0x64   : > { %p526_p2 = pneg %p525_p1 }
  0x66   : > { %p531_p0 = pnand %p530_p8, %p526_p2 }
  0x68   : > { %534 = shalt.err (!%p531_p0)
}
  0x69   : > { %385 = dma.vmem_to_hbm [thread:$0]  (%p664_p9), %s262_s20, 128, %s259_s3, %s248_s7  }
  0x6a PF: > { %s273_s16 = sand.u32 1, %s573_s9   ;;  %p789_p3 = scmp.ge.s32.totalorder %s593_s14, 2 }
  0x6b   : > { %s274_s18 = scalar_lea.sflag [#allocation4], %s273_s16 }
  0x6c   : > { %p395_p13 = pnand %p789_p3, %p671_p11 }
  0x6e   : > { %p396_p5 = pneg %p395_p13 }
  0x70   : > { %568 = dma.done.wait (%p396_p5), %s274_s18, 128  }
  0x71   : > { %570 = vsyncadd (%p396_p5), %s274_s18, 4294967168  ;;  %s21_s14 = sadd.s32 1, %s593_s14   ;;  %s790_s9 = smov %s577_s10 }
  0x72   : > { %p18_p12 = scmp.ge.s32.totalorder %s21_s14, 4   ;;  %s791_s10 = smov %s581_s11 }
  0x73   : > { %s792_s11 = smov %s669_s23  ;;  %s793_s12 = smov %s589_s13 }
  0x74   : > { %s794_s13 = smov %s796_s17  ;;  %20 = sbr.rel (!%p18_p12) target bundleno = 8 (0x8), region = 90 }
  0x79   :  { %279 = vsyncpa [#allocation3], 1 }
  0x7a   :  { %281 = vsyncpa [#allocation3 + $0x1], 1 }
  0x7b   :  { %282 = vsyncpa [#allocation6], 1 }
  0x7c   :  { %284 = vsyncpa [#allocation6 + $0x1], 1 }
  0x7d   :  { %285 = vsyncpa [#allocation4], 1 }
  0x7e   :  { %287 = vsyncpa [#allocation4 + $0x1], 1 }

</bundles_post_ra>
